<compile_context>
chip_gen: v6e
topology: v6e:2x2x1
jax: 0.10.0
libtpu: 0.0.40
codegen_flags: <defaults>
</compile_context>

<pallas_src>
import jax
import jax.numpy as jnp
from jax.experimental import pallas as pl
from jax.experimental.pallas import tpu as pltpu


def _round_up(n: int, m: int) -> int:
    return ((n + m - 1) // m) * m


def _sublane_multiple(dtype) -> int:
    # Minimum second-to-last-dim multiple for dense packed sublanes.
    return {4: 8, 2: 16, 1: 32}.get(jnp.dtype(dtype).itemsize, 8)


def _device_kind() -> str:
    try:
        return jax.devices()[0].device_kind.lower()
    except Exception:  # pragma: no cover
        return ""


def _tile_defaults(kind: str):
    # (tm, tn, tk) defaults per generation (bf16 operands assumed).
    if "v5" in kind:
        return 512, 512, 512
    if "v7" in kind or "7x" in kind:
        return 512, 512, 1024
    if "v6" in kind:
        return 1024, 1024, 1024
    return 512, 512, 512  # conservative fallback


# ---------------------------------------------------------------------------
# Kernels
# ---------------------------------------------------------------------------
def _linear_kernel_f32out(x_ref, w_ref, b_ref, o_ref):
    """Output dtype is f32: accumulate directly into the resident output block."""
    k = pl.program_id(2)

    @pl.when(k == 0)
    def _():
        o_ref[...] = jnp.zeros_like(o_ref)

    o_ref[...] += jnp.dot(x_ref[...], w_ref[...],
                          preferred_element_type=jnp.float32)

    @pl.when(k == pl.num_programs(2) - 1)
    def _():
        o_ref[...] += b_ref[...]


def _linear_kernel_acc(x_ref, w_ref, b_ref, o_ref, acc_ref):
    """Non-f32 output: f32 VMEM accumulator, bias-add + cast on the last K step."""
    k = pl.program_id(2)

    @pl.when(k == 0)
    def _():
        acc_ref[...] = jnp.zeros_like(acc_ref)

    acc_ref[...] += jnp.dot(x_ref[...], w_ref[...],
                            preferred_element_type=jnp.float32)

    @pl.when(k == pl.num_programs(2) - 1)
    def _():
        o_ref[...] = (acc_ref[...] + b_ref[...]).astype(o_ref.dtype)


# ---------------------------------------------------------------------------
# Wrapper: prepares weights once, dispatches per call
# ---------------------------------------------------------------------------
class PallasLinear:
    """y = x @ W^T + b with one-time weight layout/cast preparation."""

    def __init__(self, weight, bias, *, compute_dtype=jnp.bfloat16,
                 tm=None, tn=None, tk=None):
        self.out_dim, self.in_dim = weight.shape
        kind = _device_kind()
        self._is_v7x = ("v7" in kind) or ("7x" in kind)
        tm_d, tn_d, tk_d = _tile_defaults(kind)

        self.tm = tm if tm is not None else tm_d
        self.tn_eff = min(tn if tn is not None else tn_d,
                          _round_up(self.out_dim, 128))
        self.tk_eff = min(tk if tk is not None else tk_d,
                          _round_up(self.in_dim, 128))
        self.Np = _round_up(self.out_dim, self.tn_eff)
        self.Kp = _round_up(self.in_dim, self.tk_eff)
        self.compute_dtype = compute_dtype

        # One-time weight prep: transpose (out,in) -> (K,N), zero-pad, cast.
        w_kn = jnp.pad(weight.T,
                       ((0, self.Kp - self.in_dim), (0, self.Np - self.out_dim)))
        if compute_dtype is not None and w_kn.dtype != jnp.dtype(compute_dtype):
            w_kn = w_kn.astype(compute_dtype)
        self.w_kn = w_kn
        self.b_row = (jnp.pad(bias, (0, self.Np - self.out_dim))
                      .reshape(1, self.Np).astype(jnp.float32))

        # Raw params retained for the tiny-shape fast path.
        self.weight = weight
        self.bias = bias

    def __call__(self, x, *, force_pallas=False, min_flops_for_pallas=1_000_000):
        B, in_dim = x.shape
        assert in_dim == self.in_dim, "input feature dim mismatch"
        out_dtype = x.dtype

        # Small-shape fast path: pallas_call dispatch + pad/slice dominates.
        flops = 2 * B * self.in_dim * self.out_dim
        if not force_pallas and flops < min_flops_for_pallas:
            return (x @ self.weight.T + self.bias).astype(out_dtype)

        cd = self.compute_dtype if self.compute_dtype is not None else x.dtype
        sub = _sublane_multiple(cd)
        tm_eff = min(self.tm, _round_up(B, sub))
        Mp = _round_up(B, tm_eff)

        tn_eff = self.tn_eff
        # v7x: with a single M block, split N so both TensorCores get work.
        if (self._is_v7x and Mp // tm_eff == 1
                and self.Np // tn_eff == 1 and tn_eff % 256 == 0):
            tn_eff //= 2

        x_p = jnp.pad(x, ((0, Mp - B), (0, self.Kp - in_dim)))
        if x_p.dtype != jnp.dtype(cd):
            x_p = x_p.astype(cd)

        grid = (Mp // tm_eff, self.Np // tn_eff, self.Kp // self.tk_eff)
        grid_m, grid_n, _ = grid

        cost = pl.CostEstimate(
            flops=2 * Mp * self.Np * self.Kp,
            transcendentals=0,
            bytes_accessed=(x_p.size * x_p.dtype.itemsize * grid_n
                            + self.w_kn.size * self.w_kn.dtype.itemsize * grid_m
                            + self.b_row.size * self.b_row.dtype.itemsize * grid_m
                            + Mp * self.Np * jnp.dtype(out_dtype).itemsize),
        )

        in_specs = [
            pl.BlockSpec((tm_eff, self.tk_eff), lambda i, j, k: (i, k)),  # x  (M,K)
            pl.BlockSpec((self.tk_eff, tn_eff), lambda i, j, k: (k, j)),  # w  (K,N)
            pl.BlockSpec((1, tn_eff),           lambda i, j, k: (0, j)),  # bias
        ]
        out_spec = pl.BlockSpec((tm_eff, tn_eff), lambda i, j, k: (i, j))

        if jnp.dtype(out_dtype) == jnp.dtype(jnp.float32):
            kernel, scratch = _linear_kernel_f32out, []
        else:
            kernel = _linear_kernel_acc
            scratch = [pltpu.VMEM((tm_eff, tn_eff), jnp.float32)]

        y_p = pl.pallas_call(
            kernel,
            out_shape=jax.ShapeDtypeStruct((Mp, self.Np), out_dtype),
            grid_spec=pltpu.PrefetchScalarGridSpec(
                num_scalar_prefetch=0,
                grid=grid,
                in_specs=in_specs,
                out_specs=out_spec,
                scratch_shapes=scratch,
            ),
            compiler_params=pltpu.CompilerParams(
                dimension_semantics=("parallel", "parallel", "arbitrary"),
            ),
            cost_estimate=cost,
        )(x_p, self.w_kn, self.b_row)

        return y_p[:B, :self.out_dim]


if __name__ == "__main__":
    input_dim = 2
    output_dim = 2
    batch = 8

    key = jax.random.PRNGKey(0)
    kx, kw, kb, kx2, kw2, kb2 = jax.random.split(key, 6)

    # PyTorch nn.Linear init: U(-1/sqrt(fan_in), 1/sqrt(fan_in))
    bound = 1.0 / (input_dim ** 0.5)
    weight = jax.random.uniform(kw, (output_dim, input_dim),
                                minval=-bound, maxval=bound, dtype=jnp.float32)
    bias = jax.random.uniform(kb, (output_dim,),
                              minval=-bound, maxval=bound, dtype=jnp.float32)
    x = jax.random.normal(kx, (batch, input_dim), dtype=jnp.float32)
    y_ref = x @ weight.T + bias

    # (a) deployed tiny shape -> fast path (plain XLA dot)
    model = PallasLinear(weight, bias)  # default bf16 operands
    y_fast = jax.block_until_ready(model(x))
    assert y_fast.shape == (batch, output_dim)
    assert jnp.allclose(y_fast, y_ref, atol=1e-5, rtol=1e-5), "fast path mismatch"

    # (b) tiny shape forced through the Pallas kernel, f32 operands: strict check
    model_f32 = PallasLinear(weight, bias, compute_dtype=None)
    y_pallas = jax.block_until_ready(model_f32(x, force_pallas=True))
    assert jnp.allclose(y_pallas, y_ref, atol=1e-5, rtol=1e-5), "f32 pallas mismatch"

    # (c) tiny shape through the Pallas kernel, bf16 operands (default): loose check
    y_pallas_bf16 = jax.block_until_ready(model(x, force_pallas=True))
    assert jnp.allclose(y_pallas_bf16, y_ref, atol=2e-2, rtol=2e-2), "bf16 pallas mismatch"

    # (d) larger shape exercising a real (M, N, K) grid with K-axis accumulation
    B2, in2, out2 = 64, 384, 256
    bound2 = 1.0 / (in2 ** 0.5)
    w2 = jax.random.uniform(kw2, (out2, in2), minval=-bound2, maxval=bound2,
                            dtype=jnp.float32)
    b2 = jax.random.uniform(kb2, (out2,), minval=-bound2, maxval=bound2,
                            dtype=jnp.float32)
    x2 = jax.random.normal(kx2, (B2, in2), dtype=jnp.float32)
    y2_ref = x2 @ w2.T + b2

    model2_f32 = PallasLinear(w2, b2, compute_dtype=None, tm=64, tn=128, tk=128)
    y2 = jax.block_until_ready(model2_f32(x2))  # grid (1, 2, 3), direct-acc kernel
    assert jnp.allclose(y2, y2_ref, atol=1e-3, rtol=1e-3), "tiled f32 mismatch"

    # (e) bf16 input & output -> exercises the scratch-accumulator kernel
    model2_bf16 = PallasLinear(w2, b2, tm=64, tn=128, tk=128)
    y2_bf16 = jax.block_until_ready(model2_bf16(x2.astype(jnp.bfloat16)))
    assert jnp.allclose(y2_bf16.astype(jnp.float32), y2_ref,
                        atol=5e-2, rtol=5e-2), "tiled bf16 mismatch"

    print("KERNEL_OK")
</pallas_src>

<mosaic_0001>
module attributes {stable_mosaic.version = 11 : i64} {
  func.func @_linear_kernel_f32out(%arg0: i32, %arg1: i32, %arg2: i32, %arg3: memref<8x128xf32, #tpu.memory_space<vmem>>, %arg4: memref<128x128xf32, #tpu.memory_space<vmem>>, %arg5: memref<1x128xf32, #tpu.memory_space<vmem>>, %arg6: memref<8x128xf32, #tpu.memory_space<vmem>>) attributes {dimension_semantics = [#tpu.dimension_semantics<parallel>, #tpu.dimension_semantics<parallel>, #tpu.dimension_semantics<arbitrary>], iteration_bounds = array<i64: 1, 1, 1>, scalar_prefetch = 0 : i64, scratch_operands = 0 : i64, tpu.core_type = #tpu.core_type<tc>, window_params = [{transform_indices = @transform_0, window_bounds = array<i64: 8, 128>}, {transform_indices = @transform_1, window_bounds = array<i64: 128, 128>}, {transform_indices = @transform_2, window_bounds = array<i64: 1, 128>}, {transform_indices = @transform_3, window_bounds = array<i64: 8, 128>}]} {
    %c0_i32 = arith.constant 0 : i32
    %0 = arith.cmpi eq, %arg2, %c0_i32 : i32
    %1 = arith.extui %0 : i1 to i32
    %c0_i32_0 = arith.constant 0 : i32
    %2 = arith.cmpi ne, %1, %c0_i32_0 : i32
    scf.if %2 {
      %cst_10 = arith.constant 0.000000e+00 : f32
      %12 = vector.broadcast %cst_10 : f32 to vector<8x128xf32>
      %c0_11 = arith.constant 0 : index
      %c0_12 = arith.constant 0 : index
      %13 = vector.load %arg6[%c0_11, %c0_12] : memref<8x128xf32, #tpu.memory_space<vmem>>, vector<8x128xf32>
      tpu.vector_store %arg6[%c0_11, %c0_12], %12 {strides = array<i32>} : memref<8x128xf32, #tpu.memory_space<vmem>>, vector<8x128xf32>,
    } else {
    }
    %c0 = arith.constant 0 : index
    %c0_1 = arith.constant 0 : index
    %3 = vector.load %arg6[%c0, %c0_1] : memref<8x128xf32, #tpu.memory_space<vmem>>, vector<8x128xf32>
    %c0_2 = arith.constant 0 : index
    %c0_3 = arith.constant 0 : index
    %4 = vector.load %arg3[%c0_2, %c0_3] : memref<8x128xf32, #tpu.memory_space<vmem>>, vector<8x128xf32>
    %c0_4 = arith.constant 0 : index
    %c0_5 = arith.constant 0 : index
    %5 = vector.load %arg4[%c0_4, %c0_5] : memref<128x128xf32, #tpu.memory_space<vmem>>, vector<128x128xf32>
    %cst = arith.constant dense<0.000000e+00> : vector<8x128xf32>
    %6 = tpu.matmul %4, %5, %cst {dimension_numbers = #tpu.dot_dimension_numbers<[1], [0], [0], [1], [0, 0, 1, 1], [], []>} : vector<8x128xf32>, vector<128x128xf32>, vector<8x128xf32> -> vector<8x128xf32>
    %7 = arith.addf %3, %6 : vector<8x128xf32>
    %c0_6 = arith.constant 0 : index
    %c0_7 = arith.constant 0 : index
    %8 = vector.load %arg6[%c0_6, %c0_7] : memref<8x128xf32, #tpu.memory_space<vmem>>, vector<8x128xf32>
    tpu.vector_store %arg6[%c0_6, %c0_7], %7 {strides = array<i32>} : memref<8x128xf32, #tpu.memory_space<vmem>>, vector<8x128xf32>,
    %c0_i32_8 = arith.constant 0 : i32
    %9 = arith.cmpi eq, %arg2, %c0_i32_8 : i32
    %10 = arith.extui %9 : i1 to i32
    %c0_i32_9 = arith.constant 0 : i32
    %11 = arith.cmpi ne, %10, %c0_i32_9 : i32
    scf.if %11 {
      %c0_10 = arith.constant 0 : index
      %c0_11 = arith.constant 0 : index
      %12 = vector.load %arg6[%c0_10, %c0_11] : memref<8x128xf32, #tpu.memory_space<vmem>>, vector<8x128xf32>
      %c0_12 = arith.constant 0 : index
      %c0_13 = arith.constant 0 : index
      %13 = vector.load %arg5[%c0_12, %c0_13] : memref<1x128xf32, #tpu.memory_space<vmem>>, vector<1x128xf32>
      %14 = vector.broadcast %13 : vector<1x128xf32> to vector<8x128xf32>
      %15 = arith.addf %12, %14 : vector<8x128xf32>
      %c0_14 = arith.constant 0 : index
      %c0_15 = arith.constant 0 : index
      %16 = vector.load %arg6[%c0_14, %c0_15] : memref<8x128xf32, #tpu.memory_space<vmem>>, vector<8x128xf32>
      tpu.vector_store %arg6[%c0_14, %c0_15], %15 {strides = array<i32>} : memref<8x128xf32, #tpu.memory_space<vmem>>, vector<8x128xf32>,
    } else {
    }
    return
  }
  func.func @transform_0(%arg0: i32, %arg1: i32, %arg2: i32) -> (i32, i32) {
    %c0_i32 = arith.constant 0 : i32
    return %arg0, %arg2 : i32, i32
  }
  func.func @transform_1(%arg0: i32, %arg1: i32, %arg2: i32) -> (i32, i32) {
    %c0_i32 = arith.constant 0 : i32
    return %arg2, %arg1 : i32, i32
  }
  func.func @transform_2(%arg0: i32, %arg1: i32, %arg2: i32) -> (i32, i32) {
    %c0_i32 = arith.constant 0 : i32
    %c0_i32_0 = arith.constant 0 : i32
    return %c0_i32, %arg1 : i32, i32
  }
  func.func @transform_3(%arg0: i32, %arg1: i32, %arg2: i32) -> (i32, i32) {
    %c0_i32 = arith.constant 0 : i32
    return %arg0, %arg1 : i32, i32
  }
}

</mosaic_0001>

<bundles_post_ra>
// kernel: tpu_custom_call.1
= control target key start
LH: loop header
LB: loop body
LE: loop exit
PB: predicated region body
PF: predicated region fallthrough
CT: control target
= control target key end

     0   :  { %8 = vsyncpa [#allocation3], 0  ;;  %s330_s0 = inlined_call_operand.hbm [shape: f32[8,128], index: 0, kind: input, shape index: {}]   ;;  %s331_s1 = inlined_call_operand.hbm [shape: f32[128,128], index: 1, kind: input, shape index: {}]   ;;  %s332_s2 = inlined_call_operand.vmem [shape: f32[1,128], index: 2, kind: input, shape index: {}]   ;;  %s333_s3 = inlined_call_operand.hbm [shape: f32[8,128], index: 3, kind: output, shape index: {}]  }
   0x1   :  { %9 = vsyncpa [#allocation6], 0 }
   0x2   :  { %10 = vsyncpa [#allocation4], 0  ;;  %s291_s12 = smov [#allocation2]   ;;  %s292_s14 = smov [#allocation5]  }
   0x3   :  { %s17_s13 = sshll.u32 %s291_s12, 4  ;;  %s26_s15 = sshll.u32 %s292_s14, 4  ;;  %s18_s13 = int_to_ptr.vmem [resolvable:$true] %s17_s13  ;;  %s27_s15 = int_to_ptr.vmem [resolvable:$true] %s26_s15 }
   0x4   :  { %s233_s16 = scalar_lea.vmem %s18_s13, 128  ;;  %p238_p1 = scmp.lt.s32.totalorder %s18_s13, %s18_s13 }
   0x5   :  { %p234_p0 = scmp.ne.s32.totalorder %s18_s13, %s233_s16  ;;  %p239_p2 = scmp.lt.s32.totalorder %s233_s16, %s233_s16 }
   0x7   :  { %p240_p3 = por %p239_p2, %p238_p1 }
   0x9   :  { %p241_p4 = pnand %p240_p3, %p234_p0 }
   0xb   :  { %244 = shalt.err (!%p241_p4)
}
   0xc   :  { %20 = dma.hbm_to_vmem [thread:$0]  %s330_s0, 128, %s18_s13, [#allocation3]  }
   0xd   :  { %s253_s19 = scalar_lea.vmem %s27_s15, 2048  ;;  %p258_p6 = scmp.lt.s32.totalorder %s27_s15, %s27_s15 }
   0xe   :  { %p254_p5 = scmp.ne.s32.totalorder %s27_s15, %s253_s19  ;;  %p259_p7 = scmp.lt.s32.totalorder %s253_s19, %s253_s19 }
  0x10   :  { %p260_p8 = por %p259_p7, %p258_p6 }
  0x12   :  { %p261_p9 = pnand %p260_p8, %p254_p5 }
  0x14   :  { %264 = shalt.err (!%p261_p9)
}
  0x15   :  { %s293_s20 = smov 128   ;;  %s294_s21 = smov 8  }
  0x16   :  { %32 = dma.hbm_to_vmem [thread:$0]  %s331_s1, 2048, %s27_s15, [#allocation6], %s293_s20, %s293_s20, %s294_s21  }
  0x17   :  { %285 = dma.done.wait [#allocation3], 128  }
  0x18   :  { %286 = vsyncadd [#allocation3], 4294967168 }
  0x19   :  { %287 = dma.done.wait [#allocation6], 2048  }
  0x1a   :  { %288 = vsyncadd [#allocation6], 4294965248  ;;  %v295_v0 = vmov 0.0   ;;  %vm296_vm0 = vmmov 0   ;;  %v63_v1 = vld [vmem:[#allocation5 + $0x78] sm:$0xff]  ;;  %v62_v2 = vld [vmem:[#allocation5 + $0x70] sm:$0xff] }
  0x1b   :  { %183 = vmatprep.subr.mxu0 %v295_v0  ;;  %215 = vmatprep.mubr.msk.f32.mxu0 %vm296_vm0, %v295_v0  ;;  %v61_v3 = vld [vmem:[#allocation5 + $0x68] sm:$0xff]  ;;  %v60_v4 = vld [vmem:[#allocation5 + $0x60] sm:$0xff]  ;;  %v59_v5 = vld [vmem:[#allocation5 + $0x58] sm:$0xff]  ;;  %s297_s24 = smov [#allocation7]  }
  0x1c   :  { %184 = vmatpush3.msra.mxu0 %v63_v1  ;;  %v58_v6 = vld [vmem:[#allocation5 + $0x50] sm:$0xff]  ;;  %v57_v7 = vld [vmem:[#allocation5 + $0x48] sm:$0xff]  ;;  %v56_v8 = vld [vmem:[#allocation5 + $0x40] sm:$0xff]  ;;  %s155_s25 = sshll.u32 %s297_s24, 4  ;;  %s156_s25 = int_to_ptr.vmem [resolvable:$true] %s155_s25 }
  0x1d   :  { %185 = vmatprep.subr.mxu0 %v295_v0  ;;  %v55_v9 = vld [vmem:[#allocation5 + $0x38] sm:$0xff]  ;;  %v54_v10 = vld [vmem:[#allocation5 + $0x30] sm:$0xff]  ;;  %v53_v11 = vld [vmem:[#allocation5 + $0x28] sm:$0xff]  ;;  %s265_s26 = scalar_lea.vmem %s156_s25, 128  ;;  %p270_p11 = scmp.lt.s32.totalorder %s156_s25, %s156_s25 }
  0x1e   :  { %186 = vmatpush3.msra.mxu0 %v62_v2  ;;  %v52_v12 = vld [vmem:[#allocation5 + $0x20] sm:$0xff]  ;;  %v51_v13 = vld [vmem:[#allocation5 + $0x18] sm:$0xff]  ;;  %v50_v14 = vld [vmem:[#allocation5 + $0x10] sm:$0xff]  ;;  %p266_p10 = scmp.ne.s32.totalorder %s156_s25, %s265_s26  ;;  %p271_p12 = scmp.lt.s32.totalorder %s265_s26, %s265_s26 }
  0x1f   :  { %187 = vmatprep.subr.mxu0 %v295_v0  ;;  %v49_v15 = vld [vmem:[#allocation5 + $0x8] sm:$0xff]  ;;  %v48_v16 = vld [vmem:[#allocation5] sm:$0xff]  ;;  %v47_v17 = vld [vmem:[#allocation2] sm:$0xff] }
  0x20   :  { %188 = vmatpush3.msra.mxu0 %v61_v3  ;;  %v165_v19 = vld [vmem:[%s332_s2] ss:$0 sm:$0xff]  ;;  %p272_p13 = por %p271_p12, %p270_p11 }
  0x21   :  { %189 = vmatprep.subr.mxu0 %v295_v0 }
  0x22   :  { %190 = vmatpush3.msra.mxu0 %v60_v4  ;;  %p273_p0 = pnand %p272_p13, %p266_p10 }
  0x23   :  { %191 = vmatprep.subr.mxu0 %v295_v0 }
  0x24   :  { %192 = vmatpush3.msra.mxu0 %v59_v5 }
  0x25   :  { %193 = vmatprep.subr.mxu0 %v295_v0 }
  0x26   :  { %194 = vmatpush3.msra.mxu0 %v58_v6 }
  0x27   :  { %195 = vmatprep.subr.mxu0 %v295_v0 }
  0x28   :  { %196 = vmatpush3.msra.mxu0 %v57_v7 }
  0x29   :  { %197 = vmatprep.subr.mxu0 %v295_v0 }
  0x2a   :  { %198 = vmatpush3.msra.mxu0 %v56_v8 }
  0x2b   :  { %199 = vmatprep.subr.mxu0 %v295_v0 }
  0x2c   :  { %200 = vmatpush3.msra.mxu0 %v55_v9 }
  0x2d   :  { %201 = vmatprep.subr.mxu0 %v295_v0 }
  0x2e   :  { %202 = vmatpush3.msra.mxu0 %v54_v10 }
  0x2f   :  { %203 = vmatprep.subr.mxu0 %v295_v0 }
  0x30   :  { %204 = vmatpush3.msra.mxu0 %v53_v11 }
  0x31   :  { %205 = vmatprep.subr.mxu0 %v295_v0 }
  0x32   :  { %206 = vmatpush3.msra.mxu0 %v52_v12 }
  0x33   :  { %207 = vmatprep.subr.mxu0 %v295_v0 }
  0x34   :  { %208 = vmatpush3.msra.mxu0 %v51_v13 }
  0x35   :  { %209 = vmatprep.subr.mxu0 %v295_v0 }
  0x36   :  { %210 = vmatpush3.msra.mxu0 %v50_v14 }
  0x37   :  { %211 = vmatprep.subr.mxu0 %v295_v0 }
  0x38   :  { %212 = vmatpush3.msra.mxu0 %v49_v15 }
  0x39   :  { %213 = vmatprep.subr.mxu0 %v295_v0 }
  0x3a   :  { %214 = vmatpush3.msra.mxu0 %v48_v16 }
  0x3b   :  { %216 = vmatmul.mubr.f32.vlgmr.msra.gmra.mxu0 %v47_v17 }
  0xfb   :  { %v130_v18 = vpop.f32.mrf.mxu0 }
  0xfc   :  { %v147_v21 = vadd.f32 %v165_v19, %v130_v18 }
  0xfd   :  { %v217_v20 = vpop.f32.mrf.mxu0 }
  0xfe   :  { %148 = vst [vmem:[#allocation7] sm:$0xff] %v147_v21 }
  0xff   :  { %276 = shalt.err (!%p273_p0)
}
 0x100   :  { %158 = dma.vmem_to_hbm [thread:$0]  %s156_s25, 128, %s333_s3, [#allocation4]  }
 0x101   :  { %289 = dma.done.wait [#allocation4], 128  }
 0x102   :  { %290 = vsyncadd [#allocation4], 4294967168 }
 0x103   :  { %162 = vsyncpa [#allocation3], 1 }
 0x104   :  { %163 = vsyncpa [#allocation6], 1 }
 0x105   :  { %164 = vsyncpa [#allocation4], 1 }

</bundles_post_ra>
